<compile_context>
chip_gen: v7x
topology: tpu7x:2x2x1
jax: 0.10.0
libtpu: 0.0.40
codegen_flags: <defaults>
</compile_context>

<pallas_src>
import jax
import jax.numpy as jnp
from jax.experimental import pallas as pl
from jax.experimental.pallas import tpu as pltpu

C_IN = 3
C_OUT = 64
KH = KW = 3
K_FLAT = C_IN * KH * KW          # 27
K_PAD = 32                       # contraction dim padded to a multiple of 8


def _conv_matmul_kernel(w_ref, b_ref, p_ref, o_ref):
    """One column tile of the batch-fused im2col matmul.

    w_ref: (64, 32)        flattened conv weights, zero-padded K (same block every step)
    b_ref: (64, 1)         bias column
    p_ref: (32, COL_TILE)  im2col patches for this column tile (lane-dense)
    o_ref: (64, COL_TILE)  output tile (C_OUT on sublanes -> NCHW-native layout)
    """
    acc = jnp.dot(w_ref[...], p_ref[...], preferred_element_type=jnp.float32)
    o_ref[...] = (acc + b_ref[...]).astype(o_ref.dtype)


def tudui_forward(x_nchw, weight, bias, *, max_col_tile=2048):
    """x_nchw: (N, 3, H, W); weight: (64, 3, 3, 3) OIHW; bias: (64,)."""
    N, C, H, W = x_nchw.shape
    assert C == C_IN
    Ho, Wo = H - KH + 1, W - KW + 1
    M = Ho * Wo
    M_pad = ((M + 127) // 128) * 128          # lane-dense (128-multiple) per image

    # --- wrapper-side im2col, built directly in batch-fused (K, N*M_pad) layout.
    # Tap order (c, kh, kw) matches weight.reshape(64, 27) / OIHW flattening.
    # TODO(synk): for realistic H/W, form the 27 tap rows inside the kernel from
    # shifted VMEM views of the raw image block to avoid the 9x HBM inflation.
    rows = []
    for c in range(C_IN):
        for kh in range(KH):
            for kw in range(KW):
                t = x_nchw[:, c, kh:kh + Ho, kw:kw + Wo].reshape(N, M)
                t = jnp.pad(t, ((0, 0), (0, M_pad - M)))
                rows.append(t.reshape(N * M_pad))
    patches = jnp.stack(rows, axis=0)                             # (27, N*M_pad)
    patches = jnp.pad(patches, ((0, K_PAD - K_FLAT), (0, 0)))     # (32, N*M_pad)

    w_flat = weight.reshape(C_OUT, K_FLAT).astype(x_nchw.dtype)
    w_pad = jnp.pad(w_flat, ((0, 0), (0, K_PAD - K_FLAT)))        # (64, 32)
    b_col = bias.reshape(C_OUT, 1).astype(x_nchw.dtype)           # (64, 1)

    # --- column tiling: large, 128-aligned tiles keep the MXU streaming and
    # amortize per-grid-step overhead.  Pad total columns to a tile multiple.
    ncols = N * M_pad
    col_tile = min(ncols, max_col_tile)
    ncols_pad = ((ncols + col_tile - 1) // col_tile) * col_tile
    if ncols_pad != ncols:
        patches = jnp.pad(patches, ((0, 0), (0, ncols_pad - ncols)))
    grid = (ncols_pad // col_tile,)

    out2d = pl.pallas_call(
        _conv_matmul_kernel,
        out_shape=jax.ShapeDtypeStruct((C_OUT, ncols_pad), x_nchw.dtype),
        grid=grid,
        in_specs=[
            pl.BlockSpec((C_OUT, K_PAD), lambda j: (0, 0)),   # resident weights
            pl.BlockSpec((C_OUT, 1), lambda j: (0, 0)),       # resident bias
            pl.BlockSpec((K_PAD, col_tile), lambda j: (0, j)),
        ],
        out_specs=pl.BlockSpec((C_OUT, col_tile), lambda j: (0, j)),
        compiler_params=pltpu.CompilerParams(
            dimension_semantics=("parallel",)),
    )(w_pad, b_col, patches)

    # (64, ncols) -> (64, N, M_pad) -> strip per-image pad -> NCHW.
    out = out2d[:, :ncols].reshape(C_OUT, N, M_pad)[:, :, :M]
    out = jnp.transpose(out, (1, 0, 2)).reshape(N, C_OUT, Ho, Wo)
    return out


if __name__ == "__main__":
    key = jax.random.PRNGKey(0)
    kx, kw_, kb = jax.random.split(key, 3)

    # PyTorch-like uniform init with bound 1/sqrt(fan_in).
    fan_in = C_IN * KH * KW
    bound = 1.0 / (fan_in ** 0.5)
    weight = jax.random.uniform(kw_, (C_OUT, C_IN, KH, KW),
                                minval=-bound, maxval=bound, dtype=jnp.float32)
    bias = jax.random.uniform(kb, (C_OUT,), minval=-bound, maxval=bound,
                              dtype=jnp.float32)

    # Small deterministic NCHW input, like the PyTorch module expects.
    x = jax.random.normal(kx, (2, 3, 16, 16), dtype=jnp.float32)

    fwd = jax.jit(tudui_forward)
    out = jax.block_until_ready(fwd(x, weight, bias))

    # Reference: XLA convolution + bias (bias was missing in the previous test).
    ref = jax.lax.conv_general_dilated(
        x, weight, window_strides=(1, 1), padding="VALID",
        dimension_numbers=("NCHW", "OIHW", "NCHW"),
        precision=jax.lax.Precision.HIGHEST) + bias[None, :, None, None]

    assert out.shape == (2, C_OUT, 14, 14)
    max_err = float(jnp.max(jnp.abs(out - ref)))
    assert jnp.allclose(out, ref, atol=2e-2, rtol=2e-2), f"max_abs_err={max_err}"

    print("KERNEL_OK")
</pallas_src>

<mosaic_0001>
module attributes {stable_mosaic.version = 11 : i64} {
  func.func @_conv_matmul_kernel(%arg0: i32, %arg1: memref<64x32xf32, #tpu.memory_space<vmem>>, %arg2: memref<64x1xf32, #tpu.memory_space<vmem>>, %arg3: memref<32x512xf32, #tpu.memory_space<vmem>>, %arg4: memref<64x512xf32, #tpu.memory_space<vmem>>) attributes {dimension_semantics = [#tpu.dimension_semantics<parallel>], iteration_bounds = array<i64: 1>, scalar_prefetch = 0 : i64, scratch_operands = 0 : i64, tpu.core_type = #tpu.core_type<tc>, window_params = [{pipeline_mode = #tpu.pipeline_mode<synchronous>, transform_indices = @transform_0, window_bounds = array<i64: 64, 32>}, {pipeline_mode = #tpu.pipeline_mode<synchronous>, transform_indices = @transform_1, window_bounds = array<i64: 64, 1>}, {transform_indices = @transform_2, window_bounds = array<i64: 32, 512>}, {transform_indices = @transform_3, window_bounds = array<i64: 64, 512>}]} {
    %c0 = arith.constant 0 : index
    %c0_0 = arith.constant 0 : index
    %0 = vector.load %arg1[%c0, %c0_0] : memref<64x32xf32, #tpu.memory_space<vmem>>, vector<64x32xf32>
    %c0_1 = arith.constant 0 : index
    %c0_2 = arith.constant 0 : index
    %1 = vector.load %arg3[%c0_1, %c0_2] : memref<32x512xf32, #tpu.memory_space<vmem>>, vector<32x512xf32>
    %cst = arith.constant dense<0.000000e+00> : vector<64x512xf32>
    %2 = tpu.matmul %0, %1, %cst {dimension_numbers = #tpu.dot_dimension_numbers<[1], [0], [0], [1], [0, 0, 1, 1], [], []>} : vector<64x32xf32>, vector<32x512xf32>, vector<64x512xf32> -> vector<64x512xf32>
    %c0_3 = arith.constant 0 : index
    %c0_4 = arith.constant 0 : index
    %3 = vector.load %arg2[%c0_3, %c0_4] : memref<64x1xf32, #tpu.memory_space<vmem>>, vector<64x1xf32>
    %4 = vector.broadcast %3 : vector<64x1xf32> to vector<64x512xf32>
    %5 = arith.addf %2, %4 : vector<64x512xf32>
    %c0_5 = arith.constant 0 : index
    %c0_6 = arith.constant 0 : index
    %6 = vector.load %arg4[%c0_5, %c0_6] : memref<64x512xf32, #tpu.memory_space<vmem>>, vector<64x512xf32>
    tpu.vector_store %arg4[%c0_5, %c0_6], %5 {strides = array<i32>} : memref<64x512xf32, #tpu.memory_space<vmem>>, vector<64x512xf32>,
    return
  }
  func.func @transform_0(%arg0: i32) -> (i32, i32) {
    %c0_i32 = arith.constant 0 : i32
    %c0_i32_0 = arith.constant 0 : i32
    %c0_i32_1 = arith.constant 0 : i32
    return %c0_i32, %c0_i32_0 : i32, i32
  }
  func.func @transform_1(%arg0: i32) -> (i32, i32) {
    %c0_i32 = arith.constant 0 : i32
    %c0_i32_0 = arith.constant 0 : i32
    %c0_i32_1 = arith.constant 0 : i32
    return %c0_i32, %c0_i32_0 : i32, i32
  }
  func.func @transform_2(%arg0: i32) -> (i32, i32) {
    %c0_i32 = arith.constant 0 : i32
    %c0_i32_0 = arith.constant 0 : i32
    return %c0_i32, %arg0 : i32, i32
  }
  func.func @transform_3(%arg0: i32) -> (i32, i32) {
    %c0_i32 = arith.constant 0 : i32
    %c0_i32_0 = arith.constant 0 : i32
    return %c0_i32, %arg0 : i32, i32
  }
}

</mosaic_0001>

<bundles_post_ra>
// kernel: squeeze.35
= control target key start
LH: loop header
LB: loop body
LE: loop exit
PB: predicated region body
PF: predicated region fallthrough
CT: control target
= control target key end

     0   :  { %s7_s6 = smov 3  ;;  %s10_s7 = smov 3  ;;  %vm12_vm0 = vcmask 15360   ;;  %vm4_vm1 = vcmask 113664   ;;  %vm16_vm2 = vcmask 97280   ;;  %vm19_vm3 = vcmask 1048560   ;;  %s222_s0 = inlined_call_operand.vmem [shape: f32[2,1,14,14], index: 0, kind: input, shape index: {}]   ;;  %s223_s1 = inlined_call_operand.vmem [shape: f32[2,196], index: 1, kind: output, shape index: {}]  }
   0x1   :  { %v120_v0 = vld [vmem:[%s222_s0 + $0x9] ss:$16 sm:%s7_s6]   ;;  %s29_s12 = smov 3  ;;  %s22_s15 = smov 3  ;;  %vm26_vm4 = vcmask 1032064   ;;  %vm33_vm5 = vcmask 917264  }
   0x2   :  { %v121_v1 = vld [vmem:[%s222_s0 + $0x9] ss:$16 sm:%s10_s7]   ;;  %v123_v3 = vld [vmem:[%s222_s0 + $0x7] ss:$16 sm:%s29_s12]   ;;  %s148_s16 = smov 126   ;;  %s149_s17 = smov 98  }
   0x3   :  { %v13_v2 = vsel %vm12_vm0, %v121_v1, %v120_v0  ;;  %31 = vrot.lane.b32.xlu1 %v123_v3, %s149_s17  ;;  %s36_s18 = smov 3  ;;  %v122_v4 = vld [vmem:[%s222_s0 + $0x8] ss:$16 sm:%s22_s15]   ;;  %s43_s23 = smov 3  ;;  %vm40_vm6 = vcmask 802464   ;;  %vm47_vm7 = vcmask 687664  }
   0x4   :  { %14 = vrot.lane.b32.xlu0 %v13_v2, %s148_s16  ;;  %v124_v5 = vld [vmem:[%s222_s0 + $0x6] ss:$16 sm:%s36_s18]   ;;  %s50_s24 = smov 3  ;;  %s150_s25 = smov 112   ;;  %vm54_vm8 = vcmask 572864   ;;  %vm61_vm9 = vcmask 556464  }
   0x5   :  { %s151_s26 = smov 84   ;;  %v125_v6 = vld [vmem:[%s222_s0 + $0x5] ss:$16 sm:%s43_s23]   ;;  %v126_v7 = vld [vmem:[%s222_s0 + $0x4] ss:$16 sm:%s50_s24]   ;;  %s57_s2 = smov 3 }
   0x6   :  { %s65_s3 = smov 3  ;;  %s152_s4 = smov 70   ;;  %v127_v8 = vld [vmem:[%s222_s0 + $0xd] ss:$16 sm:%s57_s2]   ;;  %vm69_vm10 = vcmask 458064   ;;  %vm76_vm11 = vcmask 441664  }
   0x7   :  { %38 = vrot.lane.b32.xlu1 %v124_v5, %s151_s26  ;;  %s153_s5 = smov 56   ;;  %v128_v9 = vld [vmem:[%s222_s0 + $0x3] ss:$16 sm:%s65_s3]   ;;  %s72_s10 = smov 3  ;;  %vm84_vm12 = vcmask 343264   ;;  %vm91_vm13 = vcmask 326864  }
   0x8   :  { %24 = vrot.lane.b32.xlu0 %v122_v4, %s150_s25  ;;  %s80_s11 = smov 3  ;;  %s2_s12 = smov 3  ;;  %v129_v11 = vld [vmem:[%s222_s0 + $0xc] ss:$16 sm:%s72_s10]   ;;  %vm99_vm14 = vcmask 228464   ;;  %vm106_vm15 = vcmask 212064  }
   0x9   :  { %v3_v10 = vld [vmem:[%s222_s0] ss:$16 sm:%s2_s12]   ;;  %s154_s15 = smov 54   ;;  %s155_s16 = smov 42   ;;  %v130_v12 = vld [vmem:[%s222_s0 + $0x2] ss:$16 sm:%s80_s11]  }
   0xa   :  { %5 = vst.msk [vmem:[#allocation0] sm:$0x3] %vm4_vm1, %v3_v10   ;;  %s87_s21 = smov 3  ;;  %s95_s22 = smov 3 }
   0xb   :  { %52 = vrot.lane.b32.xlu1 %v126_v7, %s153_s5  ;;  %s156_s23 = smov 40   ;;  %s157_s24 = smov 28   ;;  %v131_v13 = vld [vmem:[%s222_s0 + $0xb] ss:$16 sm:%s87_s21]  }
   0xc   :  { %45 = vrot.lane.b32.xlu0 %v125_v6, %s152_s4  ;;  %v132_v14 = vld [vmem:[%s222_s0 + $0x1] ss:$16 sm:%s95_s22]   ;;  %s102_s29 = smov 3  ;;  %s158_s30 = smov 26  }
   0xd   :  { %s159_s2 = smov 14   ;;  %v133_v15 = vld [vmem:[%s222_s0 + $0xa] ss:$16 sm:%s102_s29]   ;;  %s160_s0 = smov 12  }
   0xf   :  { %67 = vrot.lane.b32.xlu1 %v128_v9, %s155_s16 }
  0x10   :  { %59 = vrot.lane.b32.xlu0 %v127_v8, %s154_s15 }
  0x13   :  { %82 = vrot.lane.b32.xlu1 %v130_v12, %s157_s24 }
  0x14   :  { %74 = vrot.lane.b32.xlu0 %v129_v11, %s156_s23 }
  0x17   :  { %97 = vrot.lane.b32.xlu1 %v132_v14, %s159_s2 }
  0x18   :  { %89 = vrot.lane.b32.xlu0 %v131_v13, %s158_s30 }
  0x1c   :  { %104 = vrot.lane.b32.xlu0 %v133_v15, %s160_s0 }
  0x75   :  { %v32_v17 = vpop.permute.xlu1 %31  }
  0x76   :  { %v15_v16 = vpop.permute.xlu0 %14  }
  0x77   :  { %18 = vst.msk [vmem:[#allocation0 + $0x8] sm:$0x3] %vm16_vm2, %v15_v16  }
  0x78   :  { %20 = vst.msk [vmem:[#allocation0] sm:$0x3] %vm19_vm3, %v15_v16  }
  0x79   :  { %v39_v19 = vpop.permute.xlu1 %38  }
  0x7a   :  { %v25_v18 = vpop.permute.xlu0 %24  }
  0x7b   :  { %27 = vst.msk [vmem:[#allocation0] sm:$0x3] %vm26_vm4, %v25_v18  }
  0x7c   :  { %34 = vst.msk [vmem:[#allocation0] sm:$0x3] %vm33_vm5, %v32_v17  }
  0x7d   :  { %41 = vst.msk [vmem:[#allocation0] sm:$0x3] %vm40_vm6, %v39_v19   ;;  %v53_v21 = vpop.permute.xlu1 %52  }
  0x7e   :  { %v46_v20 = vpop.permute.xlu0 %45  }
  0x7f   :  { %48 = vst.msk [vmem:[#allocation0] sm:$0x3] %vm47_vm7, %v46_v20  }
  0x80   :  { %55 = vst.msk [vmem:[#allocation0] sm:$0x3] %vm54_vm8, %v53_v21  }
  0x81   :  { %v68_v23 = vpop.permute.xlu1 %67  }
  0x82   :  { %v60_v22 = vpop.permute.xlu0 %59   ;;  %70 = vst.msk [vmem:[#allocation0] sm:$0x3] %vm69_vm10, %v68_v23  }
  0x83   :  { %63 = vst.msk [vmem:[#allocation0 + $0x8] sm:$0x3] %vm61_vm9, %v60_v22  }
  0x85   :  { %v83_v25 = vpop.permute.xlu1 %82  }
  0x86   :  { %v75_v24 = vpop.permute.xlu0 %74   ;;  %85 = vst.msk [vmem:[#allocation0] sm:$0x3] %vm84_vm12, %v83_v25  }
  0x87   :  { %78 = vst.msk [vmem:[#allocation0 + $0x8] sm:$0x3] %vm76_vm11, %v75_v24  }
  0x89   :  { %v98_v27 = vpop.permute.xlu1 %97  }
  0x8a   :  { %v90_v26 = vpop.permute.xlu0 %89   ;;  %100 = vst.msk [vmem:[#allocation0] sm:$0x3] %vm99_vm14, %v98_v27  }
  0x8b   :  { %93 = vst.msk [vmem:[#allocation0 + $0x8] sm:$0x3] %vm91_vm13, %v90_v26  }
  0x8e   :  { %v105_v28 = vpop.permute.xlu0 %104  }
  0x8f   :  { %108 = vst.msk [vmem:[#allocation0 + $0x8] sm:$0x3] %vm106_vm15, %v105_v28  }
  0x91   :  { %v112_v29 = vld [vmem:[#allocation0] sm:$0x3] }
  0x92   :  { %114 = vst [vmem:[%s223_s1] sm:$0x3] %v112_v29 }
  0x96   :  { %v116_v30 = vld [vmem:[#allocation0 + $0x8] sm:$0x3] }
  0x97   :  { %134 = vst [vmem:[%s223_s1 + $0x2] sm:$0x3] %v116_v30 }

// kernel: tudui_forward.1
= control target key start
LH: loop header
LB: loop body
LE: loop exit
PB: predicated region body
PF: predicated region fallthrough
CT: control target
= control target key end

     0   :  { %v409_v3 = vmov 0.0   ;;  %v410_v8 = vmov 0   ;;  %vm86_vm0 = vcmask 261120   ;;  %s655_s2 = inlined_call_operand.vmem [shape: f32[32,512], index: 2, kind: input, shape index: {}]   ;;  %s656_s0 = inlined_call_operand.vmem [shape: f32[64,32], index: 0, kind: input, shape index: {}]   ;;  %s657_s1 = inlined_call_operand.vmem [shape: f32[64,1], index: 1, kind: input, shape index: {}]   ;;  %s658_s3 = inlined_call_operand.vmem [shape: f32[64,512], index: 3, kind: output, shape index: {}]  }
   0x1   :  { %v23_v0 = vld [vmem:[%s655_s2 + $0x8] sm:$0xff]  ;;  %v25_v2 = vld [vmem:[%s655_s2 + $0x18] sm:$0xff]  ;;  %175 = vmatprep.mubr.f32.mxu0 %v409_v3  ;;  %288 = vmatprep.mubr.f32.mxu1 %v409_v3  ;;  %v22_v6 = vld [vmem:[%s655_s2] sm:$0xff] }
   0x2   :  { %v27_v1 = vld [vmem:[%s655_s2 + $0x28] sm:$0xff]  ;;  %v29_v5 = vld [vmem:[%s655_s2 + $0x38] sm:$0xff]  ;;  %v26_v7 = vld [vmem:[%s655_s2 + $0x20] sm:$0xff]  ;;  %407 = vset.pattern.permute.xlu0 %v410_v8  ;;  %408 = vset.pattern.permute.xlu1 %v410_v8 }
   0x3   :  { %v389_v4 = vpack.c.bf16 %v27_v1, %v23_v0  ;;  %v397_v9 = vpack.c.bf16 %v29_v5, %v25_v2  ;;  %v391_v10 = vpack.c.bf16 %v26_v7, %v22_v6  ;;  %v24_v11 = vld [vmem:[%s655_s2 + $0x10] sm:$0xff]  ;;  %v31_v13 = vld [vmem:[%s655_s2 + $0x48] sm:$0xff]  ;;  %v33_v16 = vld [vmem:[%s655_s2 + $0x58] sm:$0xff] }
   0x4   :  { %v28_v12 = vld [vmem:[%s655_s2 + $0x30] sm:$0xff]  ;;  %v35_v15 = vld [vmem:[%s655_s2 + $0x68] sm:$0xff]  ;;  %v37_v17 = vld [vmem:[%s655_s2 + $0x78] sm:$0xff] }
   0x5   :  { %390 = vmatprep.subr.bf16.mxu0 %v389_v4  ;;  %v399_v14 = vpack.c.bf16 %v28_v12, %v24_v11  ;;  %398 = vmatprep.subr.bf16.mxu1 %v397_v9  ;;  %v393_v18 = vpack.c.bf16 %v35_v15, %v31_v13  ;;  %v401_v19 = vpack.c.bf16 %v37_v17, %v33_v16  ;;  %v30_v20 = vld [vmem:[%s655_s2 + $0x40] sm:$0xff]  ;;  %v32_v22 = vld [vmem:[%s655_s2 + $0x50] sm:$0xff]  ;;  %v39_v29 = vld [vmem:[%s657_s1 + $0x8] sm:$0xff] }
   0x6   :  { %392 = vmatpush1.bf16.msra.mxu0 %v391_v10  ;;  %v34_v21 = vld [vmem:[%s655_s2 + $0x60] sm:$0xff]  ;;  %v36_v24 = vld [vmem:[%s655_s2 + $0x70] sm:$0xff]  ;;  %v41_v30 = vld [vmem:[%s657_s1 + $0x18] sm:$0xff] }
   0x7   :  { %400 = vmatpush1.bf16.msra.mxu1 %v399_v14  ;;  %v395_v23 = vpack.c.bf16 %v34_v21, %v30_v20  ;;  %394 = vmatprep.subr.bf16.mxu0 %v393_v18  ;;  %v403_v25 = vpack.c.bf16 %v36_v24, %v32_v22  ;;  %v14_v26 = vld [vmem:[%s656_s0] sm:$0xff]  ;;  %v40_v28 = vld [vmem:[%s657_s1 + $0x10] sm:$0xff]  ;;  %v15_v31 = vld [vmem:[%s656_s0 + $0x8] sm:$0xff] }
   0x8   :  { %402 = vmatprep.subr.bf16.mxu1 %v401_v19  ;;  %v38_v27 = vld [vmem:[%s657_s1] sm:$0xff]  ;;  %58 = vperm.xlu1 %408, %v40_v28   ;;  %v43_v33 = vld [vmem:[%s657_s1 + $0x28] sm:$0xff]  ;;  %v16_v34 = vld [vmem:[%s656_s0 + $0x10] sm:$0xff] }
   0x9   :  { %48 = vperm.xlu0 %407, %v38_v27   ;;  %v42_v32 = vld [vmem:[%s657_s1 + $0x20] sm:$0xff]  ;;  %v44_v35 = vld [vmem:[%s657_s1 + $0x30] sm:$0xff]  ;;  %v45_v36 = vld [vmem:[%s657_s1 + $0x38] sm:$0xff] }
   0xa   :  { %396 = vmatpush1.bf16.msra.mxu0 %v395_v23  ;;  %v17_v37 = vld [vmem:[%s656_s0 + $0x18] sm:$0xff]  ;;  %v18_v38 = vld [vmem:[%s656_s0 + $0x20] sm:$0xff]  ;;  %v19_v39 = vld [vmem:[%s656_s0 + $0x28] sm:$0xff] }
   0xb   :  { %404 = vmatpush1.bf16.msra.mxu1 %v403_v25  ;;  %v20_v40 = vld [vmem:[%s656_s0 + $0x30] sm:$0xff]  ;;  %v21_v41 = vld [vmem:[%s656_s0 + $0x38] sm:$0xff] }
   0xc   :  { %63 = vperm.xlu1 %408, %v41_v30  }
   0xd   :  { %373 = vmatmul.mubr.msk.f32.vlgmr.msra.gmra.mrb[0].mxu0 %vm86_vm0, %v14_v26  ;;  %53 = vperm.xlu0 %407, %v39_v29  }
   0xe   :  { %381 = vmatmul.mubr.msk.f32.vlgmr.msra.gmra.mrb[0].mxu1 %vm86_vm0, %v14_v26  ;;  %181 = vmatprep.mubr.f32.mxu0 %v409_v3 }
   0xf   :  { %294 = vmatprep.mubr.f32.mxu1 %v409_v3 }
  0x10   :  { %73 = vperm.xlu1 %408, %v43_v33  }
  0x11   :  { %374 = vmatmul.mubr.msk.f32.gmra.mrb[2].mxu0 %vm86_vm0, %v15_v31  ;;  %68 = vperm.xlu0 %407, %v42_v32  }
  0x12   :  { %382 = vmatmul.mubr.msk.f32.gmra.mrb[2].mxu1 %vm86_vm0, %v15_v31  ;;  %187 = vmatprep.mubr.f32.mxu0 %v409_v3 }
  0x13   :  { %300 = vmatprep.mubr.f32.mxu1 %v409_v3 }
  0x14   :  { %83 = vperm.xlu1 %408, %v45_v36  }
  0x15   :  { %375 = vmatmul.mubr.msk.f32.gmra.mrb[4].mxu0 %vm86_vm0, %v16_v34  ;;  %78 = vperm.xlu0 %407, %v44_v35  }
  0x16   :  { %383 = vmatmul.mubr.msk.f32.gmra.mrb[4].mxu1 %vm86_vm0, %v16_v34  ;;  %193 = vmatprep.mubr.f32.mxu0 %v409_v3 }
  0x17   :  { %306 = vmatprep.mubr.f32.mxu1 %v409_v3 }
  0x19   :  { %376 = vmatmul.mubr.msk.f32.gmra.mrb[6].mxu0 %vm86_vm0, %v17_v37 }
  0x1a   :  { %384 = vmatmul.mubr.msk.f32.gmra.mrb[6].mxu1 %vm86_vm0, %v17_v37  ;;  %199 = vmatprep.mubr.f32.mxu0 %v409_v3 }
  0x1b   :  { %312 = vmatprep.mubr.f32.mxu1 %v409_v3 }
  0x1d   :  { %377 = vmatmul.mubr.msk.f32.gmra.mrb[8].mxu0 %vm86_vm0, %v18_v38 }
  0x1e   :  { %385 = vmatmul.mubr.msk.f32.gmra.mrb[8].mxu1 %vm86_vm0, %v18_v38  ;;  %205 = vmatprep.mubr.f32.mxu0 %v409_v3 }
  0x1f   :  { %318 = vmatprep.mubr.f32.mxu1 %v409_v3 }
  0x21   :  { %378 = vmatmul.mubr.msk.f32.gmra.mrb[10].mxu0 %vm86_vm0, %v19_v39 }
  0x22   :  { %386 = vmatmul.mubr.msk.f32.gmra.mrb[10].mxu1 %vm86_vm0, %v19_v39  ;;  %211 = vmatprep.mubr.f32.mxu0 %v409_v3 }
  0x23   :  { %324 = vmatprep.mubr.f32.mxu1 %v409_v3 }
  0x25   :  { %379 = vmatmul.mubr.msk.f32.gmra.mrb[12].mxu0 %vm86_vm0, %v20_v40 }
  0x26   :  { %387 = vmatmul.mubr.msk.f32.gmra.mrb[12].mxu1 %vm86_vm0, %v20_v40  ;;  %217 = vmatprep.mubr.f32.mxu0 %v409_v3 }
  0x27   :  { %330 = vmatprep.mubr.f32.mxu1 %v409_v3 }
  0x29   :  { %380 = vmatmul.mubr.msk.f32.gmra.mrb[14].mxu0 %vm86_vm0, %v21_v41 }
  0x2a   :  { %388 = vmatmul.mubr.msk.f32.gmra.mrb[14].mxu1 %vm86_vm0, %v21_v41 }
  0x87   :  { %v59_v57 = vpop.permute.xlu1 %58 }
  0x88   :  { %v49_v42 = vpop.permute.xlu0 %48 }
  0x8b   :  { %v64_v5 = vpop.permute.xlu1 %63 }
  0x8c   :  { %v54_v50 = vpop.permute.xlu0 %53 }
  0x8f   :  { %v74_v23 = vpop.permute.xlu1 %73 }
  0x90   :  { %v69_v14 = vpop.permute.xlu0 %68 }
  0x93   :  { %v84_v41 = vpop.permute.xlu1 %83 }
  0x94   :  { %v79_v32 = vpop.permute.xlu0 %78 }
  0xe0   :  { %v177_v43 = vpop.f32.mrb[0].mxu0 }
  0xe1   :  { %v178_v44 = vadd.f32 %v177_v43, %v49_v42  ;;  %v290_v45 = vpop.f32.mrb[0].mxu1  ;;  %v179_v46 = vpop.f32.mrb[1].mxu0 }
  0xe2   :  { %v291_v47 = vadd.f32 %v290_v45, %v49_v42  ;;  %v180_v48 = vadd.f32 %v179_v46, %v49_v42  ;;  %v292_v49 = vpop.f32.mrb[1].mxu1 }
  0xe3   :  { %337 = vst [vmem:[%s658_s3] sm:$0xff] %v178_v44  ;;  %v293_v51 = vadd.f32 %v292_v49, %v49_v42 }
  0xe4   :  { %339 = vst [vmem:[%s658_s3 + $0x10] sm:$0xff] %v291_v47  ;;  %338 = vst [vmem:[%s658_s3 + $0x8] sm:$0xff] %v180_v48  ;;  %v183_v52 = vpop.f32.mrb[2].mxu0 }
  0xe5   :  { %340 = vst [vmem:[%s658_s3 + $0x18] sm:$0xff] %v293_v51  ;;  %v184_v53 = vadd.f32 %v183_v52, %v54_v50  ;;  %v296_v54 = vpop.f32.mrb[2].mxu1  ;;  %v185_v55 = vpop.f32.mrb[3].mxu0 }
  0xe6   :  { %v297_v56 = vadd.f32 %v296_v54, %v54_v50  ;;  %v186_v58 = vadd.f32 %v185_v55, %v54_v50  ;;  %v298_v59 = vpop.f32.mrb[3].mxu1 }
  0xe7   :  { %341 = vst [vmem:[%s658_s3 + $0x20] sm:$0xff] %v184_v53  ;;  %v299_v60 = vadd.f32 %v298_v59, %v54_v50 }
  0xe8   :  { %343 = vst [vmem:[%s658_s3 + $0x30] sm:$0xff] %v297_v56  ;;  %342 = vst [vmem:[%s658_s3 + $0x28] sm:$0xff] %v186_v58  ;;  %v189_v61 = vpop.f32.mrb[4].mxu0 }
  0xe9   :  { %344 = vst [vmem:[%s658_s3 + $0x38] sm:$0xff] %v299_v60  ;;  %v190_v62 = vadd.f32 %v189_v61, %v59_v57  ;;  %v302_v63 = vpop.f32.mrb[4].mxu1  ;;  %v191_v0 = vpop.f32.mrb[5].mxu0 }
  0xea   :  { %v303_v1 = vadd.f32 %v302_v63, %v59_v57  ;;  %v192_v2 = vadd.f32 %v191_v0, %v59_v57  ;;  %v304_v3 = vpop.f32.mrb[5].mxu1 }
  0xeb   :  { %345 = vst [vmem:[%s658_s3 + $0x40] sm:$0xff] %v190_v62  ;;  %v305_v4 = vadd.f32 %v304_v3, %v59_v57 }
  0xec   :  { %347 = vst [vmem:[%s658_s3 + $0x50] sm:$0xff] %v303_v1  ;;  %346 = vst [vmem:[%s658_s3 + $0x48] sm:$0xff] %v192_v2  ;;  %v195_v6 = vpop.f32.mrb[6].mxu0 }
  0xed   :  { %348 = vst [vmem:[%s658_s3 + $0x58] sm:$0xff] %v305_v4  ;;  %v196_v7 = vadd.f32 %v195_v6, %v64_v5  ;;  %v308_v8 = vpop.f32.mrb[6].mxu1  ;;  %v197_v9 = vpop.f32.mrb[7].mxu0 }
  0xee   :  { %v309_v10 = vadd.f32 %v308_v8, %v64_v5  ;;  %v198_v11 = vadd.f32 %v197_v9, %v64_v5  ;;  %v310_v12 = vpop.f32.mrb[7].mxu1 }
  0xef   :  { %349 = vst [vmem:[%s658_s3 + $0x60] sm:$0xff] %v196_v7  ;;  %v311_v13 = vadd.f32 %v310_v12, %v64_v5 }
  0xf0   :  { %351 = vst [vmem:[%s658_s3 + $0x70] sm:$0xff] %v309_v10  ;;  %350 = vst [vmem:[%s658_s3 + $0x68] sm:$0xff] %v198_v11  ;;  %v201_v15 = vpop.f32.mrb[8].mxu0 }
  0xf1   :  { %352 = vst [vmem:[%s658_s3 + $0x78] sm:$0xff] %v311_v13  ;;  %v202_v16 = vadd.f32 %v201_v15, %v69_v14  ;;  %v314_v17 = vpop.f32.mrb[8].mxu1  ;;  %v203_v18 = vpop.f32.mrb[9].mxu0 }
  0xf2   :  { %v315_v19 = vadd.f32 %v314_v17, %v69_v14  ;;  %v204_v20 = vadd.f32 %v203_v18, %v69_v14  ;;  %v316_v21 = vpop.f32.mrb[9].mxu1 }
  0xf3   :  { %353 = vst [vmem:[%s658_s3 + $0x80] sm:$0xff] %v202_v16  ;;  %v317_v22 = vadd.f32 %v316_v21, %v69_v14 }
  0xf4   :  { %355 = vst [vmem:[%s658_s3 + $0x90] sm:$0xff] %v315_v19  ;;  %354 = vst [vmem:[%s658_s3 + $0x88] sm:$0xff] %v204_v20  ;;  %v207_v24 = vpop.f32.mrb[10].mxu0 }
  0xf5   :  { %356 = vst [vmem:[%s658_s3 + $0x98] sm:$0xff] %v317_v22  ;;  %v208_v25 = vadd.f32 %v207_v24, %v74_v23  ;;  %v320_v26 = vpop.f32.mrb[10].mxu1  ;;  %v209_v27 = vpop.f32.mrb[11].mxu0 }
  0xf6   :  { %v321_v28 = vadd.f32 %v320_v26, %v74_v23  ;;  %v210_v29 = vadd.f32 %v209_v27, %v74_v23  ;;  %v322_v30 = vpop.f32.mrb[11].mxu1 }
  0xf7   :  { %357 = vst [vmem:[%s658_s3 + $0xa0] sm:$0xff] %v208_v25  ;;  %v323_v31 = vadd.f32 %v322_v30, %v74_v23 }
  0xf8   :  { %359 = vst [vmem:[%s658_s3 + $0xb0] sm:$0xff] %v321_v28  ;;  %358 = vst [vmem:[%s658_s3 + $0xa8] sm:$0xff] %v210_v29  ;;  %v213_v33 = vpop.f32.mrb[12].mxu0 }
  0xf9   :  { %360 = vst [vmem:[%s658_s3 + $0xb8] sm:$0xff] %v323_v31  ;;  %v214_v34 = vadd.f32 %v213_v33, %v79_v32  ;;  %v326_v35 = vpop.f32.mrb[12].mxu1  ;;  %v215_v36 = vpop.f32.mrb[13].mxu0 }
  0xfa   :  { %v327_v37 = vadd.f32 %v326_v35, %v79_v32  ;;  %v216_v38 = vadd.f32 %v215_v36, %v79_v32  ;;  %v328_v39 = vpop.f32.mrb[13].mxu1 }
  0xfb   :  { %361 = vst [vmem:[%s658_s3 + $0xc0] sm:$0xff] %v214_v34  ;;  %v329_v40 = vadd.f32 %v328_v39, %v79_v32 }
  0xfc   :  { %363 = vst [vmem:[%s658_s3 + $0xd0] sm:$0xff] %v327_v37  ;;  %362 = vst [vmem:[%s658_s3 + $0xc8] sm:$0xff] %v216_v38  ;;  %v219_v42 = vpop.f32.mrb[14].mxu0 }
  0xfd   :  { %364 = vst [vmem:[%s658_s3 + $0xd8] sm:$0xff] %v329_v40  ;;  %v220_v43 = vadd.f32 %v219_v42, %v84_v41  ;;  %v332_v44 = vpop.f32.mrb[14].mxu1  ;;  %v221_v45 = vpop.f32.mrb[15].mxu0 }
  0xfe   :  { %v333_v46 = vadd.f32 %v332_v44, %v84_v41  ;;  %v222_v47 = vadd.f32 %v221_v45, %v84_v41  ;;  %v334_v48 = vpop.f32.mrb[15].mxu1 }
  0xff   :  { %365 = vst [vmem:[%s658_s3 + $0xe0] sm:$0xff] %v220_v43  ;;  %v335_v49 = vadd.f32 %v334_v48, %v84_v41 }
 0x100   :  { %367 = vst [vmem:[%s658_s3 + $0xf0] sm:$0xff] %v333_v46  ;;  %366 = vst [vmem:[%s658_s3 + $0xe8] sm:$0xff] %v222_v47 }
 0x101   :  { %368 = vst [vmem:[%s658_s3 + $0xf8] sm:$0xff] %v335_v49 }

</bundles_post_ra>
